<compile_context>
chip_gen: v7x
topology: tpu7x:2x2x1
jax: 0.10.0
libtpu: 0.0.40
codegen_flags: <defaults>
</compile_context>

<pallas_src>
import math

import jax
import jax.numpy as jnp
from jax import lax
from jax.experimental import pallas as pl
from jax.experimental.pallas import tpu as pltpu

K = 6              # feat_kernel_size
KCUBE = K ** 3     # 216-wide im2col contraction
K_PAD = 224        # 216 padded to a multiple of 16 (clean bf16 packing)
C_FEAT = 64        # feat_num_filters
HID = (32, 16)     # hidden_layers
N_CLASSES = 2      # num_classes
N_OUT_PAD = 8      # classifier lanes stored by the kernel (narrow output)
C_PAD = 128        # internal channel widths padded to a full lane group
BN_EPS = 1e-5


def _fused_kernel(p_ref, w0_ref, w_ref, c_ref, o_ref):
    # feature extractor: Conv3d(1->64, k=6, valid) as an im2col matmul
    # + folded BN (eval) + ReLU  (dropout = identity in eval mode)
    h = jnp.dot(p_ref[...], w0_ref[...], preferred_element_type=jnp.float32)
    h = jnp.maximum(h + c_ref[0:1, :], 0.0)
    # mlp layer 0: 1x1x1 Conv3d(64->32) + BN + ReLU (lanes padded to 128)
    h = jnp.dot(h.astype(jnp.bfloat16), w_ref[0],
                preferred_element_type=jnp.float32)
    h = jnp.maximum(h + c_ref[1:2, :], 0.0)
    # mlp layer 1: 1x1x1 Conv3d(32->16) + BN + ReLU
    h = jnp.dot(h.astype(jnp.bfloat16), w_ref[1],
                preferred_element_type=jnp.float32)
    h = jnp.maximum(h + c_ref[2:3, :], 0.0)
    # classifier: 1x1x1 Conv3d(16->2), no BN / activation.  Only the first 8
    # lanes (2 real classes + 6 zero pads) are written back -> tiny writeback.
    logits = jnp.dot(h.astype(jnp.bfloat16), w_ref[2],
                     preferred_element_type=jnp.float32) + c_ref[3:4, :]
    o_ref[...] = logits[:, :N_OUT_PAD].astype(o_ref.dtype)


def init_params(key):
    """Deterministic init mirroring init_weights():
       Conv3d: kaiming_normal_ (fan_in, relu), bias = 0
       BatchNorm3d: weight = 1, bias = 0, running_mean = 0, running_var = 1."""
    ks = jax.random.split(key, 4)

    def kaiming(k, fan_in, shape):
        return jax.random.normal(k, shape, jnp.float32) * math.sqrt(2.0 / fan_in)

    w0 = kaiming(ks[0], 1 * K ** 3, (K ** 3, C_FEAT))       # feature conv
    w1 = kaiming(ks[1], C_FEAT, (C_FEAT, HID[0]))           # 1x1x1 conv
    w2 = kaiming(ks[2], HID[0], (HID[0], HID[1]))           # 1x1x1 conv
    w3 = kaiming(ks[3], HID[1], (HID[1], N_CLASSES))        # classifier

    params = {}
    for name, w, cout, has_bn in (("l0", w0, C_FEAT, True),
                                  ("l1", w1, HID[0], True),
                                  ("l2", w2, HID[1], True),
                                  ("l3", w3, N_CLASSES, False)):
        bias = jnp.zeros((cout,), jnp.float32)
        if has_bn:
            gamma = jnp.ones((cout,), jnp.float32)
            beta = jnp.zeros((cout,), jnp.float32)
            mean = jnp.zeros((cout,), jnp.float32)
            var = jnp.ones((cout,), jnp.float32)
            scale = gamma / jnp.sqrt(var + BN_EPS)
            shift = (bias - mean) * scale + beta
            w = w * scale[None, :]                   # fold BN scale into weights
        else:
            shift = bias
        params[name] = (w, shift.reshape(1, cout))
    return params


def _pack_params(params):
    """Zero-pad channel dims to 128 lanes, cast weights bf16, stack."""
    (w0, c0) = params["l0"]
    (w1, c1) = params["l1"]
    (w2, c2) = params["l2"]
    (w3, c3) = params["l3"]

    def pad2(a, rows, cols):
        return jnp.pad(a, ((0, rows - a.shape[0]), (0, cols - a.shape[1])))

    w0p = pad2(w0, K_PAD, C_PAD).astype(jnp.bfloat16)        # (224, 128)
    w123 = jnp.stack([pad2(w1, C_PAD, C_PAD),
                      pad2(w2, C_PAD, C_PAD),
                      pad2(w3, C_PAD, C_PAD)]).astype(jnp.bfloat16)  # (3,128,128)
    c_all = jnp.stack([pad2(c, 1, C_PAD)[0]
                       for c in (c0, c1, c2, c3)]).astype(jnp.float32)  # (4,128)
    return w0p, w123, c_all


def _pick_tm(rows):
    """Largest row tile with >=4 grid steps, preferring an even step count so
    both v7x TensorCores get equal work; single-TC chips (v5e/v6e) just get a
    bigger tile for fewer ~0.35us pipeline steps."""
    best = None
    for tm in (4096, 2048, 1024, 512, 256, 128):
        steps = -(-rows // tm)
        if steps < 4:
            continue
        if steps % 2 == 0:
            return tm
        if best is None:
            best = tm
    return best if best is not None else 128


@jax.jit
def forward(x_ncdhw, params):
    n, _, d, h, w = x_ncdhw.shape
    do, ho, wo = d - K + 1, h - K + 1, w - K + 1
    rows = n * do * ho * wo

    # im2col via ONE XLA conv with a 224-channel identity filter, emitted
    # directly in channel-last (NDHWC) layout and already 224 lanes wide:
    # no transpose pass, no jnp.pad pass over the patch matrix.
    # TODO(synk): build these patch tiles in VMEM from the raw volume inside
    # the kernel to remove the HBM-materialized patch matrix entirely.
    eye = jnp.eye(K_PAD, KCUBE, dtype=jnp.bfloat16).reshape(K_PAD, 1, K, K, K)
    patches = lax.conv_general_dilated(
        x_ncdhw.astype(jnp.bfloat16), eye, (1, 1, 1), "VALID",
        dimension_numbers=("NCDHW", "OIDHW", "NDHWC"))   # (N, Do, Ho, Wo, 224)
    patches = patches.reshape(rows, K_PAD)               # contiguous, free

    w0p, w123, c_all = _pack_params(params)

    tm = _pick_tm(rows)
    grid = (pl.cdiv(rows, tm),)   # last block may overhang; rows independent

    out = pl.pallas_call(
        _fused_kernel,
        out_shape=jax.ShapeDtypeStruct((rows, N_OUT_PAD), jnp.float32),
        grid=grid,
        in_specs=[pl.BlockSpec((tm, K_PAD), lambda i: (i, 0)),
                  pl.BlockSpec(w0p.shape, lambda i: (0, 0)),
                  pl.BlockSpec(w123.shape, lambda i: (0, 0, 0)),
                  pl.BlockSpec(c_all.shape, lambda i: (0, 0))],
        out_specs=pl.BlockSpec((tm, N_OUT_PAD), lambda i: (i, 0)),
        compiler_params=pltpu.CompilerParams(
            dimension_semantics=("parallel",)),
    )(patches, w0p, w123, c_all)

    out = out[:, :N_CLASSES].reshape(n, do, ho, wo, N_CLASSES)
    return jnp.transpose(out, (0, 4, 1, 2, 3))            # back to NCDHW


def reference(x_ncdhw, params):
    """Pure-JAX f32 reference using lax 3D conv (validates im2col ordering)."""
    (w0, c0) = params["l0"]
    (w1, c1) = params["l1"]
    (w2, c2) = params["l2"]
    (w3, c3) = params["l3"]
    w_oidhw = jnp.transpose(w0.reshape(K, K, K, C_FEAT), (3, 0, 1, 2))[:, None]
    z = lax.conv_general_dilated(x_ncdhw, w_oidhw, (1, 1, 1), "VALID",
                                 dimension_numbers=("NCDHW", "OIDHW", "NCDHW"))
    n, _, do, ho, wo = z.shape
    h = jnp.maximum(jnp.transpose(z, (0, 2, 3, 4, 1)).reshape(-1, C_FEAT) + c0, 0.0)
    h = jnp.maximum(h @ w1 + c1, 0.0)
    h = jnp.maximum(h @ w2 + c2, 0.0)
    o = (h @ w3 + c3).reshape(n, do, ho, wo, N_CLASSES)
    return jnp.transpose(o, (0, 4, 1, 2, 3))


if __name__ == "__main__":
    key = jax.random.PRNGKey(0)
    pkey, xkey = jax.random.split(key)
    params = init_params(pkey)

    # x: (N=2, C=1, D=12, H=12, W=12) -> output (2, 2, 7, 7, 7)
    x = jax.random.normal(xkey, (2, 1, 12, 12, 12), jnp.float32)

    y = jax.block_until_ready(forward(x, params))
    assert y.shape == (2, N_CLASSES, 7, 7, 7), y.shape

    y_ref = reference(x, params)
    max_err = float(jnp.max(jnp.abs(y - y_ref)))
    # bf16 inputs/weights with f32 accumulation vs. pure-f32 reference.
    assert jnp.allclose(y, y_ref, atol=1e-1, rtol=1e-1), max_err

    print("KERNEL_OK")
</pallas_src>

<mosaic_0001>
module attributes {stable_mosaic.version = 11 : i64} {
  func.func @_fused_kernel(%arg0: i32, %arg1: memref<128x224xbf16, #tpu.memory_space<vmem>>, %arg2: memref<224x128xbf16, #tpu.memory_space<vmem>>, %arg3: memref<3x128x128xbf16, #tpu.memory_space<vmem>>, %arg4: memref<4x128xf32, #tpu.memory_space<vmem>>, %arg5: memref<128x8xf32, #tpu.memory_space<vmem>>) attributes {dimension_semantics = [#tpu.dimension_semantics<parallel>], iteration_bounds = array<i64: 6>, scalar_prefetch = 0 : i64, scratch_operands = 0 : i64, tpu.core_type = #tpu.core_type<tc>, window_params = [{transform_indices = @transform_0, window_bounds = array<i64: 128, 224>}, {pipeline_mode = #tpu.pipeline_mode<synchronous>, transform_indices = @transform_1, window_bounds = array<i64: 224, 128>}, {pipeline_mode = #tpu.pipeline_mode<synchronous>, transform_indices = @transform_2, window_bounds = array<i64: 3, 128, 128>}, {pipeline_mode = #tpu.pipeline_mode<synchronous>, transform_indices = @transform_3, window_bounds = array<i64: 4, 128>}, {transform_indices = @transform_4, window_bounds = array<i64: 128, 8>}]} {
    %c0 = arith.constant 0 : index
    %c0_0 = arith.constant 0 : index
    %0 = vector.load %arg1[%c0, %c0_0] : memref<128x224xbf16, #tpu.memory_space<vmem>>, vector<128x224xbf16>
    %c0_1 = arith.constant 0 : index
    %c0_2 = arith.constant 0 : index
    %1 = vector.load %arg2[%c0_1, %c0_2] : memref<224x128xbf16, #tpu.memory_space<vmem>>, vector<224x128xbf16>
    %cst = arith.constant dense<0.000000e+00> : vector<128x128xf32>
    %2 = tpu.matmul %0, %1, %cst {dimension_numbers = #tpu.dot_dimension_numbers<[1], [0], [0], [1], [0, 0, 1, 1], [], []>} : vector<128x224xbf16>, vector<224x128xbf16>, vector<128x128xf32> -> vector<128x128xf32>
    %c0_3 = arith.constant 0 : index
    %c0_4 = arith.constant 0 : index
    %3 = vector.load %arg4[%c0_3, %c0_4] : memref<4x128xf32, #tpu.memory_space<vmem>>, vector<1x128xf32>
    %4 = vector.broadcast %3 : vector<1x128xf32> to vector<128x128xf32>
    %5 = arith.addf %2, %4 : vector<128x128xf32>
    %cst_5 = arith.constant 0.000000e+00 : f32
    %6 = vector.broadcast %cst_5 : f32 to vector<128x128xf32>
    %7 = arith.maximumf %5, %6 : vector<128x128xf32>
    %8 = arith.truncf %7 : vector<128x128xf32> to vector<128x128xbf16>
    %c0_6 = arith.constant 0 : index
    %c0_7 = arith.constant 0 : index
    %c0_8 = arith.constant 0 : index
    %9 = vector.load %arg3[%c0_6, %c0_7, %c0_8] : memref<3x128x128xbf16, #tpu.memory_space<vmem>>, vector<1x128x128xbf16>
    %10 = vector.shape_cast %9 : vector<1x128x128xbf16> to vector<128x128xbf16>
    %cst_9 = arith.constant dense<0.000000e+00> : vector<128x128xf32>
    %11 = tpu.matmul %8, %10, %cst_9 {dimension_numbers = #tpu.dot_dimension_numbers<[1], [0], [0], [1], [0, 0, 1, 1], [], []>} : vector<128x128xbf16>, vector<128x128xbf16>, vector<128x128xf32> -> vector<128x128xf32>
    %c1 = arith.constant 1 : index
    %c0_10 = arith.constant 0 : index
    %12 = vector.load %arg4[%c1, %c0_10] : memref<4x128xf32, #tpu.memory_space<vmem>>, vector<1x128xf32>
    %13 = vector.broadcast %12 : vector<1x128xf32> to vector<128x128xf32>
    %14 = arith.addf %11, %13 : vector<128x128xf32>
    %cst_11 = arith.constant 0.000000e+00 : f32
    %15 = vector.broadcast %cst_11 : f32 to vector<128x128xf32>
    %16 = arith.maximumf %14, %15 : vector<128x128xf32>
    %17 = arith.truncf %16 : vector<128x128xf32> to vector<128x128xbf16>
    %c1_12 = arith.constant 1 : index
    %c0_13 = arith.constant 0 : index
    %c0_14 = arith.constant 0 : index
    %18 = vector.load %arg3[%c1_12, %c0_13, %c0_14] : memref<3x128x128xbf16, #tpu.memory_space<vmem>>, vector<1x128x128xbf16>
    %19 = vector.shape_cast %18 : vector<1x128x128xbf16> to vector<128x128xbf16>
    %cst_15 = arith.constant dense<0.000000e+00> : vector<128x128xf32>
    %20 = tpu.matmul %17, %19, %cst_15 {dimension_numbers = #tpu.dot_dimension_numbers<[1], [0], [0], [1], [0, 0, 1, 1], [], []>} : vector<128x128xbf16>, vector<128x128xbf16>, vector<128x128xf32> -> vector<128x128xf32>
    %c2 = arith.constant 2 : index
    %c0_16 = arith.constant 0 : index
    %21 = vector.load %arg4[%c2, %c0_16] : memref<4x128xf32, #tpu.memory_space<vmem>>, vector<1x128xf32>
    %22 = vector.broadcast %21 : vector<1x128xf32> to vector<128x128xf32>
    %23 = arith.addf %20, %22 : vector<128x128xf32>
    %cst_17 = arith.constant 0.000000e+00 : f32
    %24 = vector.broadcast %cst_17 : f32 to vector<128x128xf32>
    %25 = arith.maximumf %23, %24 : vector<128x128xf32>
    %26 = arith.truncf %25 : vector<128x128xf32> to vector<128x128xbf16>
    %c2_18 = arith.constant 2 : index
    %c0_19 = arith.constant 0 : index
    %c0_20 = arith.constant 0 : index
    %27 = vector.load %arg3[%c2_18, %c0_19, %c0_20] : memref<3x128x128xbf16, #tpu.memory_space<vmem>>, vector<1x128x128xbf16>
    %28 = vector.shape_cast %27 : vector<1x128x128xbf16> to vector<128x128xbf16>
    %cst_21 = arith.constant dense<0.000000e+00> : vector<128x128xf32>
    %29 = tpu.matmul %26, %28, %cst_21 {dimension_numbers = #tpu.dot_dimension_numbers<[1], [0], [0], [1], [0, 0, 1, 1], [], []>} : vector<128x128xbf16>, vector<128x128xbf16>, vector<128x128xf32> -> vector<128x128xf32>
    %c3 = arith.constant 3 : index
    %c0_22 = arith.constant 0 : index
    %30 = vector.load %arg4[%c3, %c0_22] : memref<4x128xf32, #tpu.memory_space<vmem>>, vector<1x128xf32>
    %31 = vector.broadcast %30 : vector<1x128xf32> to vector<128x128xf32>
    %32 = arith.addf %29, %31 : vector<128x128xf32>
    %33 = vector.extract_strided_slice %32 {offsets = [0, 0], sizes = [128, 8], strides = [1, 1]} : vector<128x128xf32> to vector<128x8xf32>
    %c0_23 = arith.constant 0 : index
    %c0_24 = arith.constant 0 : index
    %34 = vector.load %arg5[%c0_23, %c0_24] : memref<128x8xf32, #tpu.memory_space<vmem>>, vector<128x8xf32>
    tpu.vector_store %arg5[%c0_23, %c0_24], %33 {strides = array<i32>} : memref<128x8xf32, #tpu.memory_space<vmem>>, vector<128x8xf32>,
    return
  }
  func.func @transform_0(%arg0: i32) -> (i32, i32) {
    %c0_i32 = arith.constant 0 : i32
    %c0_i32_0 = arith.constant 0 : i32
    return %arg0, %c0_i32 : i32, i32
  }
  func.func @transform_1(%arg0: i32) -> (i32, i32) {
    %c0_i32 = arith.constant 0 : i32
    %c0_i32_0 = arith.constant 0 : i32
    %c0_i32_1 = arith.constant 0 : i32
    return %c0_i32, %c0_i32_0 : i32, i32
  }
  func.func @transform_2(%arg0: i32) -> (i32, i32, i32) {
    %c0_i32 = arith.constant 0 : i32
    %c0_i32_0 = arith.constant 0 : i32
    %c0_i32_1 = arith.constant 0 : i32
    %c0_i32_2 = arith.constant 0 : i32
    return %c0_i32, %c0_i32_0, %c0_i32_1 : i32, i32, i32
  }
  func.func @transform_3(%arg0: i32) -> (i32, i32) {
    %c0_i32 = arith.constant 0 : i32
    %c0_i32_0 = arith.constant 0 : i32
    %c0_i32_1 = arith.constant 0 : i32
    return %c0_i32, %c0_i32_0 : i32, i32
  }
  func.func @transform_4(%arg0: i32) -> (i32, i32) {
    %c0_i32 = arith.constant 0 : i32
    %c0_i32_0 = arith.constant 0 : i32
    return %arg0, %c0_i32 : i32, i32
  }
}

</mosaic_0001>

<bundles_post_ra>
// kernel: forward.1
= control target key start
LH: loop header
LB: loop body
LE: loop exit
PB: predicated region body
PF: predicated region fallthrough
CT: control target
= control target key end

     0   :  { %s1955_s15 = smov 0   ;;  %s1957_s16 = smov 0   ;;  %s2315_s0 = inlined_call_operand.vmem [shape: bf16[686,224], index: 0, kind: input, shape index: {}]   ;;  %s2316_s1 = inlined_call_operand.vmem [shape: bf16[224,128], index: 1, kind: input, shape index: {}]   ;;  %s2317_s2 = inlined_call_operand.vmem [shape: bf16[3,128,128], index: 2, kind: input, shape index: {}]   ;;  %s2318_s3 = inlined_call_operand.vmem [shape: f32[4,128], index: 3, kind: input, shape index: {}]   ;;  %s2319_s4 = inlined_call_operand.vmem [shape: f32[686,8], index: 4, kind: output, shape index: {}]  }
   0x1   :  { %s1959_s17 = smov 0  }
   0x2 LB: > { %s1968_s18 = sadd.s32 4294967295, %s1895_s17   ;;  %s1970_s19 = sadd.s32 1, %s1895_s17   ;;  %s1895_s17 = sphi %s1959_s17, %s2326_s17   ;;  %s1891_s16 = sphi %s1957_s16, %s2325_s16   ;;  %s1887_s15 = sphi %s1955_s15, %s2324_s15  }
   0x3   : > { %s107_s20 = ssub.s32 %s1895_s17, %s1970_s19  ;;  %s110_s21 = sadd.s32 1, %s1891_s16 }
   0x4   : > { %p108_p0 = scmp.eq.s32.totalorder %s107_s20, 0  ;;  %p120_p1 = scmp.ne.s32.totalorder %s1891_s16, %s1887_s15 }
   0x5   : > { %p121_p2 = scmp.eq.s32.totalorder %s1968_s18, 5  ;;  %p1422_p3 = scmp.ge.s32.totalorder %s1895_s17, 1 }
   0x6   : > { %s1978_s22 = scalar_select %p108_p0, %s1891_s16, %s110_s21  }
   0x7   : > { %p1980_p4 = por %p121_p2, %p120_p1  ;;  %p174_p5 = scmp.lt.s32.totalorder %s1895_s17, 7 }
   0x9   : > { %p175_p6 = pnand %p1422_p3, %p174_p5 }
   0xa   : > { %v1779_v0 = vld [vmem:[%s2316_s1] sm:$0xff] (!%p175_p6)   ;;  %v1929_v1 = vmov (!%p175_p6), 0   ;;  %s1988_s26 = sshll.u32 (!%p175_p6), %s1968_s18, 4  ;;  %v1780_v2 = vld [vmem:[%s2316_s1 + $0x8] sm:$0xff] (!%p175_p6)   ;;  %v1781_v3 = vld [vmem:[%s2316_s1 + $0x10] sm:$0xff] (!%p175_p6)   ;;  %vm433_vm0 = vcmask (!%p175_p6), 785408  }
   0xb   : > { %178 = sbr.rel (%p175_p6) target bundleno = 1054 (0x41e), region = 36  ;;  %458 = vmatprep.subr.bf16.mxu0 (!%p175_p6), %v1929_v1  ;;  %p211_p7 = scmp.lt.s32.totalorder (!%p175_p6), %s1988_s26, 85  ;;  %v1782_v4 = vld [vmem:[%s2316_s1 + $0x18] sm:$0xff] (!%p175_p6)   ;;  %v1783_v5 = vld [vmem:[%s2316_s1 + $0x20] sm:$0xff] (!%p175_p6)   ;;  %v1784_v7 = vld [vmem:[%s2316_s1 + $0x28] sm:$0xff] (!%p175_p6)   ;;  %vm1127_vm1 = vcmask (!%p175_p6), 64512  }
   0xc   : > { %459 = vmatpush1.bf16.msra.mxu0 (!%p175_p6), %v1779_v0  ;;  %v1785_v8 = vld [vmem:[%s2316_s1 + $0x30] sm:$0xff] (!%p175_p6)   ;;  %v1786_v9 = vld [vmem:[%s2316_s1 + $0x38] sm:$0xff] (!%p175_p6)   ;;  %v1817_v10 = vld [vmem:[%s2317_s2] sm:$0xff] (!%p175_p6)   ;;  %s202_s10 = sand.u32 (!%p175_p6), 1, %s1887_s15  }
   0xd   : > { %460 = vmatprep.subr.bf16.mxu0 (!%p175_p6), %v1929_v1  ;;  %v1818_v11 = vld [vmem:[%s2317_s2 + $0x8] sm:$0xff] (!%p175_p6)   ;;  %1594 = vmatprep.subr.bf16.mxu1 (!%p175_p6), %v1817_v10  ;;  %v1787_v12 = vld [vmem:[%s2316_s1 + $0x40] sm:$0xff] (!%p175_p6)   ;;  %v1819_v13 = vld [vmem:[%s2317_s2 + $0x10] sm:$0xff] (!%p175_p6)   ;;  %s1423_s12 = sshll.u32 (!%p175_p6), %s202_s10, 7 }
   0xe   : > { %1595 = vmatpush3.bf16.msra.mxu1 (!%p175_p6), %v1817_v10  ;;  %v1820_v14 = vld [vmem:[%s2317_s2 + $0x18] sm:$0xff] (!%p175_p6)   ;;  %v1788_v15 = vld [vmem:[%s2316_s1 + $0x48] sm:$0xff] (!%p175_p6)   ;;  %v1789_v16 = vld [vmem:[%s2316_s1 + $0x50] sm:$0xff] (!%p175_p6)   ;;  %s2181_s17 = scalar_lea.vmem (!%p175_p6), [#allocation2], %s1423_s12  }
   0xf   : > { %1596 = vmatprep.subr.bf16.mxu1 (!%p175_p6), %v1818_v11  ;;  %v1790_v17 = vld [vmem:[%s2316_s1 + $0x58] sm:$0xff] (!%p175_p6)   ;;  %v1791_v18 = vld [vmem:[%s2316_s1 + $0x60] sm:$0xff] (!%p175_p6)   ;;  %v1792_v19 = vld [vmem:[%s2316_s1 + $0x68] sm:$0xff] (!%p175_p6)  }
  0x10   : > { %461 = vmatpush1.bf16.msra.mxu0 (!%p175_p6), %v1780_v2  ;;  %v1821_v35 = vld [vmem:[%s2317_s2 + $0x20] sm:$0xff] (!%p175_p6)   ;;  %v1822_v36 = vld [vmem:[%s2317_s2 + $0x28] sm:$0xff] (!%p175_p6)   ;;  %v1823_v37 = vld [vmem:[%s2317_s2 + $0x30] sm:$0xff] (!%p175_p6)  }
  0x11   : > { %462 = vmatprep.subr.bf16.mxu0 (!%p175_p6), %v1929_v1  ;;  %v1824_v38 = vld [vmem:[%s2317_s2 + $0x38] sm:$0xff] (!%p175_p6)   ;;  %v1825_v39 = vld [vmem:[%s2317_s2 + $0x40] sm:$0xff] (!%p175_p6)   ;;  %v1826_v59 = vld [vmem:[%s2317_s2 + $0x48] sm:$0xff] (!%p175_p6)  }
  0x12   : > { %s212_s29 = scalar_select %p211_p7, %s1988_s26, 85  ;;  %1597 = vmatpush3.bf16.msra.mxu1 %v1818_v11  ;;  %v2090_v40 = vld [vmem:[%s2318_s3] ss:$0 sm:$0xff]  ;;  %v1827_v2 = vld [vmem:[%s2317_s2 + $0x50] sm:$0xff]  }
  0x13   : > { %1598 = vmatprep.subr.bf16.mxu1 %v1819_v13  ;;  %s1152_s15 = ssub.s32 (%p1980_p4), 86, %s1988_s26  ;;  %s1543_s20 = sshll.u32 (%p1980_p4), %s1968_s18, 7 }
  0x14   : > { %s1542_s6 = sshll.u32 %s212_s29, 3  ;;  %463 = vmatpush1.bf16.msra.mxu0 %v1781_v3  ;;  %p1153_p8 = scmp.lt.s32.totalorder (%p1980_p4), %s1152_s15, 16 }
  0x15   : > { %464 = vmatprep.subr.bf16.mxu0 %v1929_v1  ;;  %s2004_s11 = scalar_lea.vmem %s2315_s0, %s1542_s6  ;;  %s2222_s25 = scalar_lea.vmem (%p1980_p4), %s2319_s4, %s1543_s20  }
  0x16   : > { %v1795_v6 = vld [vmem:[%s2004_s11 + $0x4] ss:$8 sps:$4 sm:$0xff]   ;;  %1599 = vmatpush3.bf16.msra.mxu1 %v1819_v13  ;;  %v1793_v20 = vld [vmem:[%s2004_s11] ss:$8 sps:$4 sm:$0xff]   ;;  %v1796_v21 = vld [vmem:[%s2004_s11 + $0x14] ss:$8 sps:$4 sm:$0xff]  }
  0x17   : > { %1458 = vmatprep.mubr.msk.bf16.mxu0 %vm433_vm0, %v1795_v6  ;;  %1600 = vmatprep.subr.bf16.mxu1 %v1820_v14  ;;  %v1798_v22 = vld [vmem:[%s2004_s11 + $0x10] ss:$8 sps:$4 sm:$0xff]   ;;  %v1799_v23 = vld [vmem:[%s2004_s11 + $0x24] ss:$8 sps:$4 sm:$0xff]   ;;  %v1801_v24 = vld [vmem:[%s2004_s11 + $0x20] ss:$8 sps:$4 sm:$0xff]  }
  0x18   : > { %465 = vmatpush1.bf16.msra.mxu0 %v1782_v4  ;;  %v1802_v25 = vld [vmem:[%s2004_s11 + $0x34] ss:$8 sps:$4 sm:$0xff]   ;;  %v1804_v26 = vld [vmem:[%s2004_s11 + $0x30] ss:$8 sps:$4 sm:$0xff]   ;;  %v1805_v27 = vld [vmem:[%s2004_s11 + $0x44] ss:$8 sps:$4 sm:$0xff]  }
  0x19   : > { %466 = vmatprep.subr.bf16.mxu0 %v1929_v1  ;;  %v1807_v28 = vld [vmem:[%s2004_s11 + $0x40] ss:$8 sps:$4 sm:$0xff]   ;;  %v1808_v29 = vld [vmem:[%s2004_s11 + $0x54] ss:$8 sps:$4 sm:$0xff]   ;;  %v1810_v30 = vld [vmem:[%s2004_s11 + $0x50] ss:$8 sps:$4 sm:$0xff]  }
  0x1a   : > { %1601 = vmatpush3.bf16.msra.mxu1 %v1820_v14  ;;  %v1811_v31 = vld [vmem:[%s2004_s11 + $0x64] ss:$8 sps:$4 sm:$0xff]   ;;  %v1813_v32 = vld [vmem:[%s2004_s11 + $0x60] ss:$8 sps:$4 sm:$0xff]   ;;  %v1814_v33 = vld [vmem:[%s2004_s11 + $0x74] ss:$8 sps:$4 sm:$0xff]  }
  0x1b   : > { %v1816_v34 = vld [vmem:[%s2004_s11 + $0x70] ss:$8 sps:$4 sm:$0xff]   ;;  %1602 = vmatprep.subr.bf16.mxu1 %v1821_v35  ;;  %v1829_v13 = vld [vmem:[%s2317_s2 + $0x60] sm:$0xff]  }
  0x1c   : > { %467 = vmatpush1.bf16.msra.mxu0 %v1783_v5  ;;  %v1828_v6 = vld [vmem:[%s2317_s2 + $0x58] sm:$0xff]  }
  0x1d   : > { %468 = vmatprep.subr.bf16.mxu0 %v1929_v1 }
  0x1e   : > { %1603 = vmatpush3.bf16.msra.mxu1 %v1821_v35 }
  0x1f   : > { %1604 = vmatprep.subr.bf16.mxu1 %v1822_v36 }
  0x20   : > { %469 = vmatpush1.bf16.msra.mxu0 %v1784_v7 }
  0x21   : > { %470 = vmatprep.subr.bf16.mxu0 %v1929_v1 }
  0x22   : > { %1605 = vmatpush3.bf16.msra.mxu1 %v1822_v36 }
  0x23   : > { %1606 = vmatprep.subr.bf16.mxu1 %v1823_v37 }
  0x24   : > { %471 = vmatpush1.bf16.msra.mxu0 %v1785_v8 }
  0x25   : > { %472 = vmatprep.subr.bf16.mxu0 %v1929_v1 }
  0x26   : > { %1607 = vmatpush3.bf16.msra.mxu1 %v1823_v37 }
  0x27   : > { %1608 = vmatprep.subr.bf16.mxu1 %v1824_v38 }
  0x28   : > { %473 = vmatpush1.bf16.msra.mxu0 %v1786_v9 }
  0x29   : > { %474 = vmatprep.subr.bf16.mxu0 %v1929_v1 }
  0x2a   : > { %1609 = vmatpush3.bf16.msra.mxu1 %v1824_v38 }
  0x2b   : > { %1626 = vmatprep.subr.bf16.mxu1 %v1825_v39 }
  0x2c   : > { %475 = vmatpush1.bf16.msra.mxu0 %v1787_v12 }
  0x2d   : > { %476 = vmatprep.subr.bf16.mxu0 %v1929_v1 }
  0x30   : > { %477 = vmatpush1.bf16.msra.mxu0 %v1788_v15 }
  0x31   : > { %478 = vmatprep.subr.bf16.mxu0 %v1929_v1 }
  0x34   : > { %479 = vmatpush1.bf16.msra.mxu0 %v1789_v16 }
  0x35   : > { %480 = vmatprep.subr.bf16.mxu0 %v1929_v1 }
  0x38   : > { %481 = vmatpush1.bf16.msra.mxu0 %v1790_v17  ;;  %v1830_v17 = vld [vmem:[%s2317_s2 + $0x68] sm:$0xff]  }
  0x39   : > { %482 = vmatprep.subr.bf16.mxu0 %v1929_v1 }
  0x3c   : > { %483 = vmatpush1.bf16.msra.mxu0 %v1791_v18 }
  0x3d   : > { %484 = vmatprep.subr.bf16.mxu0 %v1929_v1 }
  0x40   : > { %485 = vmatpush1.bf16.msra.mxu0 %v1792_v19 }
  0x43   : > { %491 = vmatmul.mubr.bf16.vlgmr.msra.gmra.mrb[0].mxu0 %v1793_v20 }
  0x44   : > { %1459 = vmatprep.mubr.msk.bf16.mxu0 %vm433_vm0, %v1796_v21 }
  0x4b   : > { %499 = vmatmul.mubr.bf16.gmra.mrb[4].mxu0 %v1798_v22 }
  0x4c   : > { %1460 = vmatprep.mubr.msk.bf16.mxu0 %vm433_vm0, %v1799_v23 }
  0x53   : > { %507 = vmatmul.mubr.bf16.gmra.mrb[8].mxu0 %v1801_v24 }
  0x54   : > { %1461 = vmatprep.mubr.msk.bf16.mxu0 %vm433_vm0, %v1802_v25 }
  0x5b   : > { %515 = vmatmul.mubr.bf16.gmra.mrb[12].mxu0 %v1804_v26 }
  0x5c   : > { %1462 = vmatprep.mubr.msk.bf16.mxu0 %vm433_vm0, %v1805_v27 }
  0x63   : > { %523 = vmatmul.mubr.bf16.gmra.mrb[16].mxu0 %v1807_v28 }
  0x64   : > { %1463 = vmatprep.mubr.msk.bf16.mxu0 %vm433_vm0, %v1808_v29 }
  0x6b   : > { %531 = vmatmul.mubr.bf16.gmra.mrb[20].mxu0 %v1810_v30 }
  0x6c   : > { %1464 = vmatprep.mubr.msk.bf16.mxu0 %vm433_vm0, %v1811_v31 }
  0x73   : > { %539 = vmatmul.mubr.bf16.gmra.mrb[24].mxu0 %v1813_v32 }
  0x74   : > { %1465 = vmatprep.mubr.msk.bf16.mxu0 %vm433_vm0, %v1814_v33 }
  0x7b   : > { %547 = vmatmul.mubr.bf16.gmra.mrb[28].mxu0 %v1816_v34 }
 0x116   : > { %v492_v41 = vpop.f32.mrb[0].mxu0 }
 0x117   : > { %v493_v42 = vadd.f32 %v2090_v40, %v492_v41  ;;  %v494_v43 = vpop.f32.mrb[1].mxu0 }
 0x118   : > { %v495_v44 = vpop.f32.mrb[2].mxu0 }
 0x119   : > { %v496_v45 = vadd.f32 %v2090_v40, %v495_v44  ;;  %v497_v46 = vpop.f32.mrb[3].mxu0  ;;  %v555_v47 = vmax.f32 %v493_v42, 0.0 }
 0x11b   : > { %v556_v48 = vmax.f32 %v496_v45, 0.0 }
 0x11d   : > { %v571_v49 = vpack.c.bf16 %v556_v48, %v555_v47 }
 0x11e   : > { %v500_v50 = vpop.f32.mrb[4].mxu0 }
 0x11f   : > { %v501_v51 = vadd.f32 %v2090_v40, %v500_v50  ;;  %v502_v52 = vpop.f32.mrb[5].mxu0  ;;  %1610 = vmatprep.mubr.bf16.mxu1 %v571_v49 }
 0x120   : > { %v503_v53 = vpop.f32.mrb[6].mxu0 }
 0x121   : > { %v504_v54 = vadd.f32 %v2090_v40, %v503_v53  ;;  %v505_v55 = vpop.f32.mrb[7].mxu0  ;;  %v557_v56 = vmax.f32 %v501_v51, 0.0 }
 0x122   : > { %v1831_v55 = vld [vmem:[%s2317_s2 + $0x70] sm:$0xff]  }
 0x123   : > { %v558_v57 = vmax.f32 %v504_v54, 0.0 }
 0x125   : > { %v572_v58 = vpack.c.bf16 %v558_v57, %v557_v56  ;;  %v1832_v56 = vld [vmem:[%s2317_s2 + $0x78] sm:$0xff]   ;;  %v2135_v57 = vld [vmem:[%s2318_s3 + $0x1] ss:$0 sm:$0xff] }
 0x126   : > { %v508_v60 = vpop.f32.mrb[8].mxu0 }
 0x127   : > { %v509_v61 = vadd.f32 %v2090_v40, %v508_v60  ;;  %v510_v62 = vpop.f32.mrb[9].mxu0  ;;  %1611 = vmatmul.mubr.bf16.vlgmr.msra.gmra.mrb[0].mxu1 %v572_v58 }
 0x128   : > { %v511_v63 = vpop.f32.mrb[10].mxu0  ;;  %1627 = vmatpush3.bf16.msra.mxu1 %v1825_v39 }
 0x129   : > { %v512_v0 = vadd.f32 %v2090_v40, %v511_v63  ;;  %v513_v1 = vpop.f32.mrb[11].mxu0  ;;  %1628 = vmatprep.subr.bf16.mxu1 %v1826_v59  ;;  %v559_v3 = vmax.f32 %v509_v61, 0.0 }
 0x12b   : > { %v560_v4 = vmax.f32 %v512_v0, 0.0 }
 0x12c   : > { %1629 = vmatpush3.bf16.msra.mxu1 %v1826_v59 }
 0x12d   : > { %v573_v5 = vpack.c.bf16 %v560_v4, %v559_v3  ;;  %1630 = vmatprep.subr.bf16.mxu1 %v1827_v2 }
 0x12e   : > { %v516_v7 = vpop.f32.mrb[12].mxu0 }
 0x12f   : > { %v517_v8 = vadd.f32 %v2090_v40, %v516_v7  ;;  %v518_v9 = vpop.f32.mrb[13].mxu0  ;;  %1614 = vmatprep.mubr.bf16.mxu1 %v573_v5 }
 0x130   : > { %v519_v10 = vpop.f32.mrb[14].mxu0  ;;  %1631 = vmatpush3.bf16.msra.mxu1 %v1827_v2  ;;  %v1835_v9 = vld [vmem:[%s2317_s2 + $0x90] sm:$0xff]  }
 0x131   : > { %v520_v11 = vadd.f32 %v2090_v40, %v519_v10  ;;  %v521_v12 = vpop.f32.mrb[15].mxu0  ;;  %1632 = vmatprep.subr.bf16.mxu1 %v1828_v6  ;;  %v561_v14 = vmax.f32 %v517_v8, 0.0  ;;  %v1834_v8 = vld [vmem:[%s2317_s2 + $0x88] sm:$0xff]  }
 0x133   : > { %v562_v15 = vmax.f32 %v520_v11, 0.0 }
 0x134   : > { %1633 = vmatpush3.bf16.msra.mxu1 %v1828_v6 }
 0x135   : > { %v574_v16 = vpack.c.bf16 %v562_v15, %v561_v14  ;;  %1634 = vmatprep.subr.bf16.mxu1 %v1829_v13 }
 0x136   : > { %v524_v18 = vpop.f32.mrb[16].mxu0 }
 0x137   : > { %v525_v19 = vadd.f32 %v2090_v40, %v524_v18  ;;  %v526_v20 = vpop.f32.mrb[17].mxu0  ;;  %1615 = vmatmul.mubr.bf16.gmra.mrb[4].mxu1 %v574_v16 }
 0x138   : > { %v527_v21 = vpop.f32.mrb[18].mxu0  ;;  %1635 = vmatpush3.bf16.msra.mxu1 %v1829_v13  ;;  %v1836_v13 = vld [vmem:[%s2317_s2 + $0x98] sm:$0xff]  }
 0x139   : > { %v528_v22 = vadd.f32 %v2090_v40, %v527_v21  ;;  %v529_v23 = vpop.f32.mrb[19].mxu0  ;;  %1636 = vmatprep.subr.bf16.mxu1 %v1830_v17  ;;  %v563_v24 = vmax.f32 %v525_v19, 0.0  ;;  %v1837_v21 = vld [vmem:[%s2317_s2 + $0xa0] sm:$0xff]  }
 0x13b   : > { %v564_v25 = vmax.f32 %v528_v22, 0.0 }
 0x13c   : > { %1637 = vmatpush3.bf16.msra.mxu1 %v1830_v17 }
 0x13d   : > { %v575_v26 = vpack.c.bf16 %v564_v25, %v563_v24  ;;  %1638 = vmatprep.subr.bf16.mxu1 %v1831_v55 }
 0x13e   : > { %v532_v27 = vpop.f32.mrb[20].mxu0 }
 0x13f   : > { %v533_v28 = vadd.f32 %v2090_v40, %v532_v27  ;;  %v534_v29 = vpop.f32.mrb[21].mxu0  ;;  %1618 = vmatprep.mubr.bf16.mxu1 %v575_v26  ;;  %v1838_v26 = vld [vmem:[%s2317_s2 + $0xa8] sm:$0xff]  }
 0x140   : > { %v535_v30 = vpop.f32.mrb[22].mxu0  ;;  %1639 = vmatpush3.bf16.msra.mxu1 %v1831_v55 }
 0x141   : > { %v536_v31 = vadd.f32 %v2090_v40, %v535_v30  ;;  %v537_v32 = vpop.f32.mrb[23].mxu0  ;;  %v565_v33 = vmax.f32 %v533_v28, 0.0  ;;  %1640 = vmatprep.subr.bf16.mxu1 %v1832_v56 }
 0x143   : > { %v566_v34 = vmax.f32 %v536_v31, 0.0 }
 0x144   : > { %1641 = vmatpush3.bf16.msra.mxu1 %v1832_v56  ;;  %v1839_v56 = vld [vmem:[%s2317_s2 + $0xb0] sm:$0xff]  }
 0x145   : > { %v576_v35 = vpack.c.bf16 %v566_v34, %v565_v33 }
 0x146   : > { %v540_v36 = vpop.f32.mrb[24].mxu0 }
 0x147   : > { %v541_v37 = vadd.f32 %v2090_v40, %v540_v36  ;;  %v542_v38 = vpop.f32.mrb[25].mxu0  ;;  %1619 = vmatmul.mubr.bf16.gmra.mrb[8].mxu1 %v576_v35 }
 0x148   : > { %v543_v39 = vpop.f32.mrb[26].mxu0 }
 0x149   : > { %v544_v41 = vadd.f32 %v2090_v40, %v543_v39  ;;  %v545_v42 = vpop.f32.mrb[27].mxu0  ;;  %v567_v43 = vmax.f32 %v541_v37, 0.0 }
 0x14b   : > { %v568_v44 = vmax.f32 %v544_v41, 0.0 }
 0x14d   : > { %v577_v45 = vpack.c.bf16 %v568_v44, %v567_v43 }
 0x14e   : > { %v548_v46 = vpop.f32.mrb[28].mxu0 }
 0x14f   : > { %v549_v47 = vadd.f32 %v2090_v40, %v548_v46  ;;  %v550_v48 = vpop.f32.mrb[29].mxu0  ;;  %1622 = vmatprep.mubr.bf16.mxu1 %v577_v45 }
 0x150   : > { %v551_v49 = vpop.f32.mrb[30].mxu0 }
 0x151   : > { %v552_v50 = vadd.f32 %v2090_v40, %v551_v49  ;;  %v553_v51 = vpop.f32.mrb[31].mxu0  ;;  %v569_v52 = vmax.f32 %v549_v47, 0.0  ;;  %v1833_v40 = vld [vmem:[%s2317_s2 + $0x80] sm:$0xff]  }
 0x152   : > { %1658 = vmatprep.subr.bf16.mxu1 %v1833_v40 }
 0x153   : > { %v570_v53 = vmax.f32 %v552_v50, 0.0 }
 0x155   : > { %v578_v54 = vpack.c.bf16 %v570_v53, %v569_v52 }
 0x157   : > { %1623 = vmatmul.mubr.bf16.gmra.mrb[12].mxu1 %v578_v54 }
 0x1fa   : > { %v1612_v58 = vpop.f32.mrb[0].mxu1 }
 0x1fb   : > { %v691_v59 = vadd.f32 %v1612_v58, %v2135_v57  ;;  %v682_v60 = vpop.f32.mrb[1].mxu1 }
 0x1fc   : > { %v683_v61 = vadd.f32 %v2135_v57, %v682_v60  ;;  %v1613_v62 = vpop.f32.mrb[2].mxu1 }
 0x1fd   : > { %v694_v63 = vadd.f32 %v1613_v62, %v2135_v57  ;;  %v685_v0 = vpop.f32.mrb[3].mxu1  ;;  %v747_v2 = vmax.f32 %v691_v59, 0.0 }
 0x1fe   : > { %v686_v1 = vadd.f32 %v2135_v57, %v685_v0  ;;  %v745_v4 = vmax.f32 %v683_v61, 0.0 }
 0x1ff   : > { %v748_v3 = vmax.f32 %v694_v63, 0.0 }
 0x200   : > { %v746_v5 = vmax.f32 %v686_v1, 0.0 }
 0x201   : > { %v762_v6 = vpack.c.bf16 %v748_v3, %v747_v2 }
 0x202   : > { %v761_v7 = vpack.c.bf16 %v746_v5, %v745_v4 }
 0x204   : > { %1642 = vmatprep.mubr.bf16.mxu1 %v761_v7 }
 0x205   : > { %1643 = vmatmul.mubr.bf16.vlgmr.msra.gmra.mrb[16].mxu1 %v762_v6 }
 0x206   : > { %1659 = vmatpush3.bf16.msra.mxu1 %v1833_v40  ;;  %v1840_v40 = vld [vmem:[%s2317_s2 + $0xb8] sm:$0xff]  }
 0x207   : > { %1660 = vmatprep.subr.bf16.mxu1 %v1834_v8 }
 0x20a   : > { %v1616_v10 = vpop.f32.mrb[4].mxu1  ;;  %1661 = vmatpush3.bf16.msra.mxu1 %v1834_v8 }
 0x20b   : > { %v707_v11 = vadd.f32 %v1616_v10, %v2135_v57  ;;  %v698_v12 = vpop.f32.mrb[5].mxu1  ;;  %1662 = vmatprep.subr.bf16.mxu1 %v1835_v9 }
 0x20c   : > { %v699_v14 = vadd.f32 %v2135_v57, %v698_v12  ;;  %v1617_v15 = vpop.f32.mrb[6].mxu1 }
 0x20d   : > { %v710_v16 = vadd.f32 %v1617_v15, %v2135_v57  ;;  %v701_v17 = vpop.f32.mrb[7].mxu1  ;;  %v751_v19 = vmax.f32 %v707_v11, 0.0 }
 0x20e   : > { %v702_v18 = vadd.f32 %v2135_v57, %v701_v17  ;;  %1663 = vmatpush3.bf16.msra.mxu1 %v1835_v9  ;;  %v749_v22 = vmax.f32 %v699_v14, 0.0 }
 0x20f   : > { %v752_v20 = vmax.f32 %v710_v16, 0.0  ;;  %1664 = vmatprep.subr.bf16.mxu1 %v1836_v13 }
 0x210   : > { %v750_v23 = vmax.f32 %v702_v18, 0.0 }
 0x211   : > { %v764_v24 = vpack.c.bf16 %v752_v20, %v751_v19 }
 0x212   : > { %v763_v25 = vpack.c.bf16 %v750_v23, %v749_v22  ;;  %1665 = vmatpush3.bf16.msra.mxu1 %v1836_v13 }
 0x213   : > { %1666 = vmatprep.subr.bf16.mxu1 %v1837_v21 }
 0x214   : > { %1646 = vmatprep.mubr.bf16.mxu1 %v763_v25 }
 0x215   : > { %1647 = vmatmul.mubr.bf16.gmra.mrb[20].mxu1 %v764_v24 }
 0x216   : > { %1667 = vmatpush3.bf16.msra.mxu1 %v1837_v21 }
 0x217   : > { %1668 = vmatprep.subr.bf16.mxu1 %v1838_v26 }
 0x21a   : > { %v1620_v27 = vpop.f32.mrb[8].mxu1  ;;  %1669 = vmatpush3.bf16.msra.mxu1 %v1838_v26 }
 0x21b   : > { %v723_v28 = vadd.f32 %v1620_v27, %v2135_v57  ;;  %v714_v29 = vpop.f32.mrb[9].mxu1  ;;  %1670 = vmatprep.subr.bf16.mxu1 %v1839_v56 }
 0x21c   : > { %v715_v30 = vadd.f32 %v2135_v57, %v714_v29  ;;  %v1621_v31 = vpop.f32.mrb[10].mxu1 }
 0x21d   : > { %v726_v32 = vadd.f32 %v1621_v31, %v2135_v57  ;;  %v717_v33 = vpop.f32.mrb[11].mxu1  ;;  %v755_v35 = vmax.f32 %v723_v28, 0.0 }
 0x21e   : > { %v718_v34 = vadd.f32 %v2135_v57, %v717_v33  ;;  %v753_v37 = vmax.f32 %v715_v30, 0.0  ;;  %1671 = vmatpush3.bf16.msra.mxu1 %v1839_v56 }
 0x21f   : > { %v756_v36 = vmax.f32 %v726_v32, 0.0  ;;  %1672 = vmatprep.subr.bf16.mxu1 %v1840_v40 }
 0x220   : > { %v754_v38 = vmax.f32 %v718_v34, 0.0 }
 0x221   : > { %v766_v39 = vpack.c.bf16 %v756_v36, %v755_v35 }
 0x222   : > { %v765_v41 = vpack.c.bf16 %v754_v38, %v753_v37  ;;  %1673 = vmatpush3.bf16.msra.mxu1 %v1840_v40 }
 0x224   : > { %1650 = vmatprep.mubr.bf16.mxu1 %v765_v41 }
 0x225   : > { %1651 = vmatmul.mubr.bf16.gmra.mrb[24].mxu1 %v766_v39 }
 0x22a   : > { %v1624_v42 = vpop.f32.mrb[12].mxu1 }
 0x22b   : > { %v739_v43 = vadd.f32 %v1624_v42, %v2135_v57  ;;  %v730_v44 = vpop.f32.mrb[13].mxu1 }
 0x22c   : > { %v731_v45 = vadd.f32 %v2135_v57, %v730_v44  ;;  %v1625_v46 = vpop.f32.mrb[14].mxu1 }
 0x22d   : > { %v742_v47 = vadd.f32 %v1625_v46, %v2135_v57  ;;  %v733_v48 = vpop.f32.mrb[15].mxu1  ;;  %v759_v50 = vmax.f32 %v739_v43, 0.0 }
 0x22e   : > { %v734_v49 = vadd.f32 %v2135_v57, %v733_v48  ;;  %v757_v52 = vmax.f32 %v731_v45, 0.0  ;;  %v1491_v57 = vld [vmem:[%s2318_s3 + $0x2] ss:$0 sm:$0xff] }
 0x22f   : > { %v760_v51 = vmax.f32 %v742_v47, 0.0 }
 0x230   : > { %v758_v53 = vmax.f32 %v734_v49, 0.0 }
 0x231   : > { %v768_v54 = vpack.c.bf16 %v760_v51, %v759_v50  ;;  %v1516_v51 = vld [vmem:[%s2318_s3 + $0x3] ss:$0 sm:$0xff] }
 0x232   : > { %v767_v55 = vpack.c.bf16 %v758_v53, %v757_v52 }
 0x234   : > { %1654 = vmatprep.mubr.bf16.mxu1 %v767_v55 }
 0x235   : > { %1655 = vmatmul.mubr.bf16.gmra.mrb[28].mxu1 %v768_v54 }
 0x2d8   : > { %v1644_v58 = vpop.f32.mrb[16].mxu1 }
 0x2d9   : > { %v882_v59 = vadd.f32 %v1644_v58, %v1491_v57  ;;  %v873_v60 = vpop.f32.mrb[17].mxu1 }
 0x2da   : > { %v874_v61 = vadd.f32 %v1491_v57, %v873_v60  ;;  %v1645_v62 = vpop.f32.mrb[18].mxu1 }
 0x2db   : > { %v885_v63 = vadd.f32 %v1645_v62, %v1491_v57  ;;  %v876_v0 = vpop.f32.mrb[19].mxu1  ;;  %v938_v2 = vmax.f32 %v882_v59, 0.0 }
 0x2dc   : > { %v877_v1 = vadd.f32 %v1491_v57, %v876_v0  ;;  %v936_v4 = vmax.f32 %v874_v61, 0.0 }
 0x2dd   : > { %v939_v3 = vmax.f32 %v885_v63, 0.0 }
 0x2de   : > { %v937_v5 = vmax.f32 %v877_v1, 0.0 }
 0x2df   : > { %v953_v6 = vpack.c.bf16 %v939_v3, %v938_v2 }
 0x2e0   : > { %v952_v7 = vpack.c.bf16 %v937_v5, %v936_v4 }
 0x2e2   : > { %1674 = vmatprep.mubr.bf16.mxu1 %v952_v7 }
 0x2e3   : > { %1675 = vmatmul.mubr.bf16.vlgmr.msra.gmra.mrb[32].mxu1 %v953_v6 }
 0x2e8   : > { %v1648_v8 = vpop.f32.mrb[20].mxu1 }
 0x2e9   : > { %v898_v9 = vadd.f32 %v1648_v8, %v1491_v57  ;;  %v889_v10 = vpop.f32.mrb[21].mxu1 }
 0x2ea   : > { %v890_v11 = vadd.f32 %v1491_v57, %v889_v10  ;;  %v1649_v12 = vpop.f32.mrb[22].mxu1 }
 0x2eb   : > { %v901_v13 = vadd.f32 %v1649_v12, %v1491_v57  ;;  %v892_v14 = vpop.f32.mrb[23].mxu1  ;;  %v942_v16 = vmax.f32 %v898_v9, 0.0 }
 0x2ec   : > { %v893_v15 = vadd.f32 %v1491_v57, %v892_v14  ;;  %v940_v18 = vmax.f32 %v890_v11, 0.0 }
 0x2ed   : > { %v943_v17 = vmax.f32 %v901_v13, 0.0 }
 0x2ee   : > { %v941_v19 = vmax.f32 %v893_v15, 0.0 }
 0x2ef   : > { %v955_v20 = vpack.c.bf16 %v943_v17, %v942_v16 }
 0x2f0   : > { %v954_v21 = vpack.c.bf16 %v941_v19, %v940_v18 }
 0x2f2   : > { %1678 = vmatprep.mubr.bf16.mxu1 %v954_v21 }
 0x2f3   : > { %1679 = vmatmul.mubr.bf16.gmra.mrb[36].mxu1 %v955_v20 }
 0x2f8   : > { %v1652_v22 = vpop.f32.mrb[24].mxu1 }
 0x2f9   : > { %v914_v23 = vadd.f32 %v1652_v22, %v1491_v57  ;;  %v905_v24 = vpop.f32.mrb[25].mxu1 }
 0x2fa   : > { %v906_v25 = vadd.f32 %v1491_v57, %v905_v24  ;;  %v1653_v26 = vpop.f32.mrb[26].mxu1 }
 0x2fb   : > { %v917_v27 = vadd.f32 %v1653_v26, %v1491_v57  ;;  %v908_v28 = vpop.f32.mrb[27].mxu1  ;;  %v946_v30 = vmax.f32 %v914_v23, 0.0 }
 0x2fc   : > { %v909_v29 = vadd.f32 %v1491_v57, %v908_v28  ;;  %v944_v32 = vmax.f32 %v906_v25, 0.0 }
 0x2fd   : > { %v947_v31 = vmax.f32 %v917_v27, 0.0 }
 0x2fe   : > { %v945_v33 = vmax.f32 %v909_v29, 0.0 }
 0x2ff   : > { %v957_v34 = vpack.c.bf16 %v947_v31, %v946_v30 }
 0x300   : > { %v956_v35 = vpack.c.bf16 %v945_v33, %v944_v32 }
 0x302   : > { %1682 = vmatprep.mubr.bf16.mxu1 %v956_v35 }
 0x303   : > { %1683 = vmatmul.mubr.bf16.gmra.mrb[40].mxu1 %v957_v34 }
 0x308   : > { %v1656_v36 = vpop.f32.mrb[28].mxu1 }
 0x309   : > { %v930_v37 = vadd.f32 %v1656_v36, %v1491_v57  ;;  %v921_v38 = vpop.f32.mrb[29].mxu1 }
 0x30a   : > { %v922_v39 = vadd.f32 %v1491_v57, %v921_v38  ;;  %v1657_v41 = vpop.f32.mrb[30].mxu1 }
 0x30b   : > { %v933_v42 = vadd.f32 %v1657_v41, %v1491_v57  ;;  %v924_v43 = vpop.f32.mrb[31].mxu1  ;;  %v950_v45 = vmax.f32 %v930_v37, 0.0 }
 0x30c   : > { %v925_v44 = vadd.f32 %v1491_v57, %v924_v43  ;;  %v948_v47 = vmax.f32 %v922_v39, 0.0 }
 0x30d   : > { %v951_v46 = vmax.f32 %v933_v42, 0.0 }
 0x30e   : > { %v949_v48 = vmax.f32 %v925_v44, 0.0 }
 0x30f   : > { %v959_v49 = vpack.c.bf16 %v951_v46, %v950_v45 }
 0x310   : > { %v958_v50 = vpack.c.bf16 %v949_v48, %v948_v47 }
 0x312   : > { %1686 = vmatprep.mubr.bf16.mxu1 %v958_v50 }
 0x313   : > { %1687 = vmatmul.mubr.bf16.gmra.mrb[44].mxu1 %v959_v49 }
 0x3b6   : > { %v1676_v52 = vpop.f32.mrb[32].mxu1 }
 0x3b7   : > { %v1073_v53 = vadd.f32 %v1676_v52, %v1516_v51  ;;  %v1064_v54 = vpop.f32.mrb[33].mxu1 }
 0x3b8   : > { %v1065_v55 = vadd.f32 %v1516_v51, %v1064_v54  ;;  %v1677_v56 = vpop.f32.mrb[34].mxu1 }
 0x3b9   : > { %1130 = vst.msk [vmem:[%s2181_s17 + $0x10] sm:$0xff] %vm1127_vm1, %v1073_v53  ;;  %v1076_v40 = vadd.f32 %v1677_v56, %v1516_v51  ;;  %v1067_v57 = vpop.f32.mrb[35].mxu1 }
 0x3ba   : > { %1128 = vst.msk [vmem:[%s2181_s17] sm:$0xff] %vm1127_vm1, %v1065_v55  ;;  %v1068_v58 = vadd.f32 %v1516_v51, %v1067_v57 }
 0x3bb   : > { %1131 = vst.msk [vmem:[%s2181_s17 + $0x18] sm:$0xff] %vm1127_vm1, %v1076_v40 }
 0x3bc   : > { %1129 = vst.msk [vmem:[%s2181_s17 + $0x8] sm:$0xff] %vm1127_vm1, %v1068_v58 }
 0x3c6   : > { %v1680_v59 = vpop.f32.mrb[36].mxu1 }
 0x3c7   : > { %v1089_v60 = vadd.f32 %v1680_v59, %v1516_v51  ;;  %v1080_v61 = vpop.f32.mrb[37].mxu1 }
 0x3c8   : > { %v1081_v62 = vadd.f32 %v1516_v51, %v1080_v61  ;;  %v1681_v63 = vpop.f32.mrb[38].mxu1 }
 0x3c9   : > { %1134 = vst.msk [vmem:[%s2181_s17 + $0x30] sm:$0xff] %vm1127_vm1, %v1089_v60  ;;  %v1092_v0 = vadd.f32 %v1681_v63, %v1516_v51  ;;  %v1083_v1 = vpop.f32.mrb[39].mxu1 }
 0x3ca   : > { %1132 = vst.msk [vmem:[%s2181_s17 + $0x20] sm:$0xff] %vm1127_vm1, %v1081_v62  ;;  %v1084_v2 = vadd.f32 %v1516_v51, %v1083_v1 }
 0x3cb   : > { %1135 = vst.msk [vmem:[%s2181_s17 + $0x38] sm:$0xff] %vm1127_vm1, %v1092_v0 }
 0x3cc   : > { %1133 = vst.msk [vmem:[%s2181_s17 + $0x28] sm:$0xff] %vm1127_vm1, %v1084_v2 }
 0x3d6   : > { %v1684_v3 = vpop.f32.mrb[40].mxu1 }
 0x3d7   : > { %v1105_v4 = vadd.f32 %v1684_v3, %v1516_v51  ;;  %v1096_v5 = vpop.f32.mrb[41].mxu1 }
 0x3d8   : > { %v1097_v6 = vadd.f32 %v1516_v51, %v1096_v5  ;;  %v1685_v7 = vpop.f32.mrb[42].mxu1 }
 0x3d9   : > { %1138 = vst.msk [vmem:[%s2181_s17 + $0x50] sm:$0xff] %vm1127_vm1, %v1105_v4  ;;  %v1108_v8 = vadd.f32 %v1685_v7, %v1516_v51  ;;  %v1099_v9 = vpop.f32.mrb[43].mxu1 }
 0x3da   : > { %1136 = vst.msk [vmem:[%s2181_s17 + $0x40] sm:$0xff] %vm1127_vm1, %v1097_v6  ;;  %v1100_v10 = vadd.f32 %v1516_v51, %v1099_v9 }
 0x3db   : > { %1139 = vst.msk [vmem:[%s2181_s17 + $0x58] sm:$0xff] %vm1127_vm1, %v1108_v8 }
 0x3dc   : > { %1137 = vst.msk [vmem:[%s2181_s17 + $0x48] sm:$0xff] %vm1127_vm1, %v1100_v10 }
 0x3e6   : > { %v1688_v11 = vpop.f32.mrb[44].mxu1  ;;  %1150 = sbr.rel (!%p1980_p4) target bundleno = 1054 (0x41e), region = 40 }
 0x3e7   : > { %v1121_v12 = vadd.f32 %v1688_v11, %v1516_v51  ;;  %v1112_v13 = vpop.f32.mrb[45].mxu1 }
 0x3e8   : > { %v1113_v14 = vadd.f32 %v1516_v51, %v1112_v13  ;;  %v1689_v15 = vpop.f32.mrb[46].mxu1 }
 0x3e9   : > { %1142 = vst.msk [vmem:[%s2181_s17 + $0x70] sm:$0xff] %vm1127_vm1, %v1121_v12  ;;  %v1124_v16 = vadd.f32 %v1689_v15, %v1516_v51  ;;  %v1115_v17 = vpop.f32.mrb[47].mxu1 }
 0x3ea   : > { %1140 = vst.msk [vmem:[%s2181_s17 + $0x60] sm:$0xff] %vm1127_vm1, %v1113_v14  ;;  %v1116_v18 = vadd.f32 %v1516_v51, %v1115_v17 }
 0x3eb   : > { %1143 = vst.msk [vmem:[%s2181_s17 + $0x78] sm:$0xff] %vm1127_vm1, %v1124_v16 }
 0x3ec   : > { %1141 = vst.msk [vmem:[%s2181_s17 + $0x68] sm:$0xff] %vm1127_vm1, %v1116_v18 }
 0x3ed   : > { %s2328_s15 = smov (!%p1153_p8, %s1152_s15), 16 }
 0x3ee   : > { %s1527_s27 = sshll.u32 %s2328_s15, 7 }
 0x3ef   : > { %p1530_p9 = scmp.eq.s32.totalorder %s1527_s27, 0 }
 0x3f0   : > { %s2228_s28 = sshrl.u32 (!%p1530_p9), %s2328_s15, 4 }
 0x3f1   : > { %1161 = sbr.rel (%p1530_p9) target bundleno = 1054 (0x41e), region = 44  ;;  %p1531_p10 = scmp.le.s32.totalorder (!%p1530_p9), %s2228_s28, 0 }
 0x3f8   : > { %1375 = sbr.rel (%p1531_p10) target bundleno = 1033 (0x409), region = 122  ;;  %s2321_s18 = smov (!%p1531_p10), %s2222_s25 }
 0x3f9   : > { %s2322_s23 = smov (!%p1531_p10), %s2181_s17  ;;  %s2237_s26 = smov (!%p1531_p10), 0  }
 0x3fa   : > { %s2239_s29 = smov (!%p1531_p10), 0  }
 0x3ff LB: >> { %v1253_v19 = vld [vmem:[%s1903_s23] sm:$0xff]  ;;  %v1255_v20 = vld [vmem:[%s1903_s23 + $0x8] sm:$0xff]  ;;  %v1257_v21 = vld [vmem:[%s1903_s23 + $0x10] sm:$0xff]  ;;  %s1285_s30 = sadd.s32 1, %s1907_s26  ;;  %s1247_s29 = sadd.s32 1, %s1911_s29   ;;  %s1911_s29 = sphi %s2239_s29, %s1247_s29   ;;  %s1907_s26 = sphi %s2237_s26, %s2323_s26   ;;  %s1903_s23 = sphi %s2322_s23, %s1290_s23   ;;  %s1899_s18 = sphi %s2321_s18, %s1291_s18  }
 0x400   : >> { %1254 = vst [vmem:[%s1899_s18] sm:$0xff] %v1253_v19  ;;  %1256 = vst [vmem:[%s1899_s18 + $0x8] sm:$0xff] %v1255_v20  ;;  %v1259_v22 = vld [vmem:[%s1903_s23 + $0x18] sm:$0xff]  ;;  %v1261_v23 = vld [vmem:[%s1903_s23 + $0x20] sm:$0xff]  ;;  %p1286_p11 = scmp.ge.s32.totalorder %s1285_s30, %s2228_s28  ;;  %p1246_p12 = scmp.ge.s32.totalorder %s1247_s29, %s2228_s28 }
 0x401   : >> { %1258 = vst [vmem:[%s1899_s18 + $0x10] sm:$0xff] %v1257_v21  ;;  %v1263_v24 = vld [vmem:[%s1903_s23 + $0x28] sm:$0xff]  ;;  %1260 = vst [vmem:[%s1899_s18 + $0x18] sm:$0xff] %v1259_v22  ;;  %v1265_v25 = vld [vmem:[%s1903_s23 + $0x30] sm:$0xff] }
 0x402   : >> { %1262 = vst [vmem:[%s1899_s18 + $0x20] sm:$0xff] %v1261_v23  ;;  %1264 = vst [vmem:[%s1899_s18 + $0x28] sm:$0xff] %v1263_v24  ;;  %v1267_v26 = vld [vmem:[%s1903_s23 + $0x38] sm:$0xff]  ;;  %v1269_v27 = vld [vmem:[%s1903_s23 + $0x40] sm:$0xff]  ;;  %s2330_s30 = smov (%p1286_p11, %s1285_s30), 0  ;;  %1249 = sbr.rel (!%p1246_p12) target bundleno = 1023 (0x3ff), region = 128 }
 0x403   : >> { %1266 = vst [vmem:[%s1899_s18 + $0x30] sm:$0xff] %v1265_v25  ;;  %1268 = vst [vmem:[%s1899_s18 + $0x38] sm:$0xff] %v1267_v26  ;;  %v1271_v28 = vld [vmem:[%s1903_s23 + $0x48] sm:$0xff]  ;;  %v1273_v29 = vld [vmem:[%s1903_s23 + $0x50] sm:$0xff]  ;;  %s1532_s5 = sshll.u32 %s2330_s30, 7  ;;  %s2323_s26 = smov %s2330_s30 }
 0x404   : >> { %1270 = vst [vmem:[%s1899_s18 + $0x40] sm:$0xff] %v1269_v27  ;;  %v1275_v30 = vld [vmem:[%s1903_s23 + $0x58] sm:$0xff]  ;;  %1272 = vst [vmem:[%s1899_s18 + $0x48] sm:$0xff] %v1271_v28  ;;  %v1277_v31 = vld [vmem:[%s1903_s23 + $0x60] sm:$0xff] }
 0x405   : >> { %1274 = vst [vmem:[%s1899_s18 + $0x50] sm:$0xff] %v1273_v29  ;;  %1276 = vst [vmem:[%s1899_s18 + $0x58] sm:$0xff] %v1275_v30  ;;  %v1279_v32 = vld [vmem:[%s1903_s23 + $0x68] sm:$0xff]  ;;  %v1281_v33 = vld [vmem:[%s1903_s23 + $0x70] sm:$0xff] }
 0x406   : >> { %1278 = vst [vmem:[%s1899_s18 + $0x60] sm:$0xff] %v1277_v31  ;;  %1280 = vst [vmem:[%s1899_s18 + $0x68] sm:$0xff] %v1279_v32  ;;  %v1283_v34 = vld [vmem:[%s1903_s23 + $0x78] sm:$0xff]  ;;  %s1290_s23 = scalar_lea.vmem %s2181_s17, %s1532_s5 [#allocation2]  }
 0x407   : >> { %1282 = vst [vmem:[%s1899_s18 + $0x70] sm:$0xff] %v1281_v33  ;;  %1284 = vst [vmem:[%s1899_s18 + $0x78] sm:$0xff] %v1283_v34  ;;  %s1291_s18 = scalar_lea.vmem %s2222_s25, %s1532_s5  }
 0x409 PF: > { %s2297_s6 = sand.u32 15, %s2328_s15   ;;  %s1544_s7 = sshll.u32 %s2228_s28, 7 }
 0x40a   : > { %s1296_s8 = scalar_lea.vmem %s2181_s17, %s1544_s7 [#allocation2]   ;;  %s1298_s11 = scalar_lea.vmem %s2222_s25, %s1544_s7  }
 0x40b   : > { %p1537_p13 = scmp.le.s32.totalorder %s2297_s6, 0 }
 0x40c   : > { %s1913_s9 = smov (!%p1537_p13), %s1298_s11   ;;  %s1917_s10 = smov (!%p1537_p13), %s1296_s8  }
 0x40d   : > { %1389 = sbr.rel (%p1537_p13) target bundleno = 1054 (0x41e), region = 133  ;;  %s1921_s12 = smov (!%p1537_p13), 0  }
 0x40e   : > { %s1925_s13 = smov (!%p1537_p13), 0  }
 0x414 LB: >> { %v1308_v35 = vld [vmem:[%s1919_s10] sm:$0xff]  ;;  %s1310_s14 = sadd.s32 1, %s1923_s12  ;;  %s1302_s13 = sadd.s32 1, %s1927_s13   ;;  %s1927_s13 = sphi %s1925_s13, %s1302_s13   ;;  %s1923_s12 = sphi %s1921_s12, %s1922_s12   ;;  %s1919_s10 = sphi %s1917_s10, %s1315_s10   ;;  %s1915_s9 = sphi %s1913_s9, %s1316_s9  }
 0x415   : >> { %1309 = vst [vmem:[%s1915_s9] sm:$0xff] %v1308_v35  ;;  %p1311_p0 = scmp.ge.s32.totalorder %s1310_s14, %s2297_s6  ;;  %p1301_p1 = scmp.ge.s32.totalorder %s1302_s13, %s2297_s6 }
 0x417   : >> { %s2332_s14 = smov (%p1311_p0, %s1310_s14), 0  ;;  %1304 = sbr.rel (!%p1301_p1) target bundleno = 1044 (0x414), region = 139 }
 0x418   : >> { %s1538_s17 = sshll.u32 %s2332_s14, 3  ;;  %s1922_s12 = smov %s2332_s14  }
 0x419   : >> { %s1315_s10 = scalar_lea.vmem %s1296_s8, %s1538_s17 [#allocation2]   ;;  %s1316_s9 = scalar_lea.vmem %s1298_s11, %s1538_s17  }
 0x41e PF: > { %p11_p2 = scmp.ge.s32.totalorder %s1970_s19, 8   ;;  %s2324_s15 = smov %s1891_s16 }
 0x41f   : > { %s2325_s16 = smov %s1978_s22  ;;  %s2326_s17 = smov %s1970_s19 }
 0x420   :  { %13 = sbr.rel (!%p11_p2) target bundleno = 2 (0x2), region = 150 }

</bundles_post_ra>
